<compile_context>
chip_gen: v7x
topology: tpu7x:2x2x1
jax: 0.10.0
libtpu: 0.0.40
codegen_flags: <defaults>
</compile_context>

<pallas_src>
import functools

import jax
import jax.numpy as jnp
from jax.experimental import pallas as pl
from jax.experimental.pallas import tpu as pltpu

LANE = 128  # TPU lane width; hidden width / input features are zero-padded to this.


def _round_up(n, m):
    return ((n + m - 1) // m) * m


def _mlp_kernel(depth, x_ref, w_ref, aux_ref, o_ref):
    """Fused MLP forward over one batch tile.

    x_ref:   [TM, 128]          input, features zero-padded 6 -> 128
    w_ref:   [depth*128, 128]   packed weight slab; layer l lives at rows
                                [l*128 : (l+1)*128] (zero-padded to 128x128)
    aux_ref: [depth+2, 128]     rows 0..depth-1 : per-layer biases
                                row depth       : output weight row (w_out^T)
                                row depth+1     : output bias (broadcast over lanes)
    o_ref:   [TM, 128]          result broadcast across all 128 lanes
    """
    h = x_ref[...]
    # depth == 1 input layer + (depth-1) hidden layers, each matmul + tanh.
    # Zero-padded lanes stay exactly zero through tanh, so padding is exact.
    for l in range(depth):
        w_l = w_ref[l * LANE:(l + 1) * LANE, :]          # [128, 128] static slice
        b_l = aux_ref[l:l + 1, :]                        # [1, 128]
        h = jnp.tanh(
            jnp.dot(h, w_l, preferred_element_type=jnp.float32) + b_l
        )
    # Output layer: [TM, W] @ [W, 1] as a VPU multiply + cross-lane reduction
    # (keeps the N=1 projection off the MXU epilogue path).
    w_out_row = aux_ref[depth:depth + 1, :]              # [1, 128]
    b_out = aux_ref[depth + 1:depth + 2, 0:1]            # [1, 1]
    y = jnp.sum(h * w_out_row, axis=-1, keepdims=True) + b_out   # [TM, 1]
    # Lane-dense (unmasked) store; wrapper slices column 0.
    o_ref[...] = jnp.broadcast_to(y, o_ref.shape)


def make_net_params(key, width, depth, dtype=jnp.float32):
    """PyTorch-Linear-style uniform(-1/sqrt(fan_in)) init, stored as [in, out]."""
    n_hidden = depth - 1
    keys = jax.random.split(key, 6)

    def uni(k, shape, fan_in):
        bound = 1.0 / jnp.sqrt(jnp.asarray(fan_in, dtype))
        return jax.random.uniform(k, shape, dtype, -bound, bound)

    return {
        "w_in": uni(keys[0], (6, width), 6),
        "b_in": uni(keys[1], (1, width), 6),
        "w_hid": uni(keys[2], (n_hidden, width, width), width),
        "b_hid": uni(keys[3], (n_hidden, 1, width), width),
        "w_out": uni(keys[4], (width, 1), width),
        "b_out": uni(keys[5], (1, 1), width),
    }


def pack_params(params, width, depth):
    """Pack all layer params into one weight slab + one aux slab (done once)."""
    n_hidden = depth - 1
    w_slab = jnp.zeros((depth * LANE, LANE), jnp.float32)
    w_slab = w_slab.at[0:params["w_in"].shape[0], 0:width].set(params["w_in"])
    for i in range(n_hidden):
        r0 = (i + 1) * LANE
        w_slab = w_slab.at[r0:r0 + width, 0:width].set(params["w_hid"][i])

    aux = jnp.zeros((depth + 2, LANE), jnp.float32)
    aux = aux.at[0, 0:width].set(params["b_in"][0])
    for i in range(n_hidden):
        aux = aux.at[1 + i, 0:width].set(params["b_hid"][i, 0])
    aux = aux.at[depth, 0:width].set(params["w_out"][:, 0])
    aux = aux.at[depth + 1, :].set(params["b_out"][0, 0])
    return w_slab, aux


def net_forward(x, w_slab, aux, depth, *, tm=128):
    """Run the fused Pallas MLP. x: [batch, 6] float32 -> [batch, 1] float32.

    tm: batch tile (rows per grid step).  128 is safe on all generations;
        use 256 on v6e / v7x to match the 2x256x256 MXU.
    """
    batch, feat = x.shape
    tm = min(tm, _round_up(batch, 8))          # don't over-pad tiny batches
    num_tiles = pl.cdiv(batch, tm)
    b_pad = num_tiles * tm

    # Zero-pad batch to a tile multiple and features to the 128-lane width.
    x_p = jnp.zeros((b_pad, LANE), jnp.float32).at[:batch, :feat].set(
        x.astype(jnp.float32))

    kernel = functools.partial(_mlp_kernel, depth)

    out = pl.pallas_call(
        kernel,
        out_shape=jax.ShapeDtypeStruct((b_pad, LANE), jnp.float32),
        grid=(num_tiles,),
        in_specs=[
            # Activations: one batch tile per grid step (double-buffered).
            pl.BlockSpec((tm, LANE), lambda i: (i, 0)),
            # Weight / aux slabs: constant block index -> VMEM-resident
            # across all batch tiles (no re-DMA).
            pl.BlockSpec(w_slab.shape, lambda i: (0, 0)),
            pl.BlockSpec(aux.shape, lambda i: (0, 0)),
        ],
        out_specs=pl.BlockSpec((tm, LANE), lambda i: (i, 0)),
        compiler_params=pltpu.CompilerParams(
            dimension_semantics=("parallel",)),
    )(x_p, w_slab, aux)

    return out[:batch, :1]


def net_forward_ref(x, params, depth):
    """Pure-JAX reference for correctness checking."""
    h = jnp.tanh(x @ params["w_in"] + params["b_in"])
    for i in range(depth - 1):
        h = jnp.tanh(h @ params["w_hid"][i] + params["b_hid"][i])
    return h @ params["w_out"] + params["b_out"]


if __name__ == "__main__":
    width = 32
    depth = 3          # input layer + 2 hidden layers + output layer
    batch = 8

    key = jax.random.PRNGKey(0)
    k_params, k_x = jax.random.split(key)

    params = make_net_params(k_params, width, depth)
    w_slab, aux = pack_params(params, width, depth)

    # Small-shape run (single tile).
    x = jax.random.normal(k_x, (batch, 6), dtype=jnp.float32)
    out = jax.block_until_ready(net_forward(x, w_slab, aux, depth))
    ref = net_forward_ref(x, params, depth)
    assert out.shape == (batch, 1), out.shape
    assert jnp.allclose(out, ref, atol=1e-5, rtol=1e-5)

    # Larger batch to exercise the gridded / weight-resident path (3 tiles).
    x_big = jax.random.normal(jax.random.PRNGKey(1), (300, 6), dtype=jnp.float32)
    out_big = jax.block_until_ready(net_forward(x_big, w_slab, aux, depth, tm=128))
    ref_big = net_forward_ref(x_big, params, depth)
    assert out_big.shape == (300, 1), out_big.shape
    assert jnp.allclose(out_big, ref_big, atol=1e-5, rtol=1e-5)

    print("KERNEL_OK")
</pallas_src>

<mosaic_0001>
module attributes {stable_mosaic.version = 11 : i64} {
  func.func @_mlp_kernel(%arg0: i32, %arg1: memref<8x128xf32, #tpu.memory_space<vmem>>, %arg2: memref<384x128xf32, #tpu.memory_space<vmem>>, %arg3: memref<5x128xf32, #tpu.memory_space<vmem>>, %arg4: memref<8x128xf32, #tpu.memory_space<vmem>>) attributes {dimension_semantics = [#tpu.dimension_semantics<parallel>], iteration_bounds = array<i64: 1>, scalar_prefetch = 0 : i64, scratch_operands = 0 : i64, tpu.core_type = #tpu.core_type<tc>, window_params = [{transform_indices = @transform_0, window_bounds = array<i64: 8, 128>}, {pipeline_mode = #tpu.pipeline_mode<synchronous>, transform_indices = @transform_1, window_bounds = array<i64: 384, 128>}, {pipeline_mode = #tpu.pipeline_mode<synchronous>, transform_indices = @transform_2, window_bounds = array<i64: 5, 128>}, {transform_indices = @transform_3, window_bounds = array<i64: 8, 128>}]} {
    %c0 = arith.constant 0 : index
    %c0_0 = arith.constant 0 : index
    %0 = vector.load %arg1[%c0, %c0_0] : memref<8x128xf32, #tpu.memory_space<vmem>>, vector<8x128xf32>
    %c0_1 = arith.constant 0 : index
    %c0_2 = arith.constant 0 : index
    %1 = vector.load %arg2[%c0_1, %c0_2] : memref<384x128xf32, #tpu.memory_space<vmem>>, vector<128x128xf32>
    %c0_3 = arith.constant 0 : index
    %c0_4 = arith.constant 0 : index
    %2 = vector.load %arg3[%c0_3, %c0_4] : memref<5x128xf32, #tpu.memory_space<vmem>>, vector<1x128xf32>
    %cst = arith.constant dense<0.000000e+00> : vector<8x128xf32>
    %3 = tpu.matmul %0, %1, %cst {dimension_numbers = #tpu.dot_dimension_numbers<[1], [0], [0], [1], [0, 0, 1, 1], [], []>} : vector<8x128xf32>, vector<128x128xf32>, vector<8x128xf32> -> vector<8x128xf32>
    %4 = vector.broadcast %2 : vector<1x128xf32> to vector<8x128xf32>
    %5 = arith.addf %3, %4 : vector<8x128xf32>
    %6 = math.tanh %5 : vector<8x128xf32>
    %c128 = arith.constant 128 : index
    %c0_5 = arith.constant 0 : index
    %7 = vector.load %arg2[%c128, %c0_5] : memref<384x128xf32, #tpu.memory_space<vmem>>, vector<128x128xf32>
    %c1 = arith.constant 1 : index
    %c0_6 = arith.constant 0 : index
    %8 = vector.load %arg3[%c1, %c0_6] : memref<5x128xf32, #tpu.memory_space<vmem>>, vector<1x128xf32>
    %cst_7 = arith.constant dense<0.000000e+00> : vector<8x128xf32>
    %9 = tpu.matmul %6, %7, %cst_7 {dimension_numbers = #tpu.dot_dimension_numbers<[1], [0], [0], [1], [0, 0, 1, 1], [], []>} : vector<8x128xf32>, vector<128x128xf32>, vector<8x128xf32> -> vector<8x128xf32>
    %10 = vector.broadcast %8 : vector<1x128xf32> to vector<8x128xf32>
    %11 = arith.addf %9, %10 : vector<8x128xf32>
    %12 = math.tanh %11 : vector<8x128xf32>
    %c256 = arith.constant 256 : index
    %c0_8 = arith.constant 0 : index
    %13 = vector.load %arg2[%c256, %c0_8] : memref<384x128xf32, #tpu.memory_space<vmem>>, vector<128x128xf32>
    %c2 = arith.constant 2 : index
    %c0_9 = arith.constant 0 : index
    %14 = vector.load %arg3[%c2, %c0_9] : memref<5x128xf32, #tpu.memory_space<vmem>>, vector<1x128xf32>
    %cst_10 = arith.constant dense<0.000000e+00> : vector<8x128xf32>
    %15 = tpu.matmul %12, %13, %cst_10 {dimension_numbers = #tpu.dot_dimension_numbers<[1], [0], [0], [1], [0, 0, 1, 1], [], []>} : vector<8x128xf32>, vector<128x128xf32>, vector<8x128xf32> -> vector<8x128xf32>
    %16 = vector.broadcast %14 : vector<1x128xf32> to vector<8x128xf32>
    %17 = arith.addf %15, %16 : vector<8x128xf32>
    %18 = math.tanh %17 : vector<8x128xf32>
    %c3 = arith.constant 3 : index
    %c0_11 = arith.constant 0 : index
    %19 = vector.load %arg3[%c3, %c0_11] : memref<5x128xf32, #tpu.memory_space<vmem>>, vector<1x128xf32>
    %c4 = arith.constant 4 : index
    %c0_12 = arith.constant 0 : index
    %20 = vector.load %arg3[%c4, %c0_12] : memref<5x128xf32, #tpu.memory_space<vmem>>, vector<1x1xf32>
    %21 = vector.broadcast %19 : vector<1x128xf32> to vector<8x128xf32>
    %22 = arith.mulf %18, %21 : vector<8x128xf32>
    %cst_13 = arith.constant dense<0.000000e+00> : vector<8xf32>
    %23 = vector.multi_reduction <add>, %22, %cst_13 [1] : vector<8x128xf32> to vector<8xf32>
    %24 = vector.shape_cast %23 : vector<8xf32> to vector<8x1xf32>
    %25 = vector.broadcast %20 : vector<1x1xf32> to vector<8x1xf32>
    %26 = arith.addf %24, %25 : vector<8x1xf32>
    %27 = vector.shape_cast %26 : vector<8x1xf32> to vector<8x1xf32>
    %28 = vector.broadcast %27 : vector<8x1xf32> to vector<8x128xf32>
    %c0_14 = arith.constant 0 : index
    %c0_15 = arith.constant 0 : index
    %29 = vector.load %arg4[%c0_14, %c0_15] : memref<8x128xf32, #tpu.memory_space<vmem>>, vector<8x128xf32>
    tpu.vector_store %arg4[%c0_14, %c0_15], %28 {strides = array<i32>} : memref<8x128xf32, #tpu.memory_space<vmem>>, vector<8x128xf32>,
    return
  }
  func.func @transform_0(%arg0: i32) -> (i32, i32) {
    %c0_i32 = arith.constant 0 : i32
    %c0_i32_0 = arith.constant 0 : i32
    return %arg0, %c0_i32 : i32, i32
  }
  func.func @transform_1(%arg0: i32) -> (i32, i32) {
    %c0_i32 = arith.constant 0 : i32
    %c0_i32_0 = arith.constant 0 : i32
    %c0_i32_1 = arith.constant 0 : i32
    return %c0_i32, %c0_i32_0 : i32, i32
  }
  func.func @transform_2(%arg0: i32) -> (i32, i32) {
    %c0_i32 = arith.constant 0 : i32
    %c0_i32_0 = arith.constant 0 : i32
    %c0_i32_1 = arith.constant 0 : i32
    return %c0_i32, %c0_i32_0 : i32, i32
  }
  func.func @transform_3(%arg0: i32) -> (i32, i32) {
    %c0_i32 = arith.constant 0 : i32
    %c0_i32_0 = arith.constant 0 : i32
    return %arg0, %c0_i32 : i32, i32
  }
}

</mosaic_0001>

<bundles_post_ra>
// kernel: tpu_custom_call.1
= control target key start
LH: loop header
LB: loop body
LE: loop exit
PB: predicated region body
PF: predicated region fallthrough
CT: control target
= control target key end

     0   :  { %8 = vsyncpa [#allocation3], 0  ;;  %s817_s0 = inlined_call_operand.hbm [shape: f32[8,128], index: 0, kind: input, shape index: {}]   ;;  %s818_s1 = inlined_call_operand.hbm [shape: f32[384,128], index: 1, kind: input, shape index: {}]   ;;  %s819_s2 = inlined_call_operand.hbm [shape: f32[5,128], index: 2, kind: input, shape index: {}]   ;;  %s820_s3 = inlined_call_operand.hbm [shape: f32[8,128], index: 3, kind: output, shape index: {}]  }
   0x1   :  { %9 = vsyncpa [#allocation6], 0 }
   0x2   :  { %10 = vsyncpa [#allocation4], 0  ;;  %s709_s12 = smov [#allocation5]   ;;  %s615_s16 = scalar_lea.hbm %s818_s1, 6144 }
   0x3   :  { %s26_s13 = sshll.u32 %s709_s12, 4  ;;  %p616_p0 = scmp.ne.s32.totalorder %s818_s1, %s615_s16  ;;  %s27_s13 = int_to_ptr.vmem [resolvable:$true] %s26_s13 }
   0x4   :  { %p619_p1 = scmp.lt.u32.totalorder %s615_s16, %s818_s1 }
   0x6   :  { %p621_p2 = pnand %p619_p1, %p616_p0 }
   0x8   :  { %624 = shalt.err (!%p621_p2)
}
   0x9   :  { %s625_s21 = scalar_lea.vmem %s27_s13, 6144  ;;  %p630_p4 = scmp.lt.s32.totalorder %s27_s13, %s27_s13 }
   0xa   :  { %p626_p3 = scmp.ne.s32.totalorder %s27_s13, %s625_s21  ;;  %p631_p5 = scmp.lt.s32.totalorder %s625_s21, %s625_s21 }
   0xc   :  { %p632_p6 = por %p631_p5, %p630_p4 }
   0xe   :  { %p633_p7 = pnand %p632_p6, %p626_p3 }
  0x10   :  { %636 = shalt.err (!%p633_p7)
}
  0x11   :  { %s710_s22 = smov 128   ;;  %s711_s23 = smov 8  }
  0x12   :  { %32 = dma.hbm_to_vmem [thread:$0]  %s818_s1, 6144, %s27_s13, [#allocation6], %s710_s22, %s710_s22, %s711_s23  }
  0x13   :  { %s712_s26 = smov [#allocation2]   ;;  %s713_s28 = smov [#allocation7]  }
  0x14   :  { %s17_s27 = sshll.u32 %s712_s26, 4  ;;  %s39_s29 = sshll.u32 %s713_s28, 4  ;;  %s18_s27 = int_to_ptr.vmem [resolvable:$true] %s17_s27  ;;  %s40_s29 = int_to_ptr.vmem [resolvable:$true] %s39_s29 }
  0x15   :  { %s637_s5 = scalar_lea.hbm %s817_s0, 128 }
  0x16   :  { %p638_p8 = scmp.ne.s32.totalorder %s817_s0, %s637_s5  ;;  %p641_p9 = scmp.lt.u32.totalorder %s637_s5, %s817_s0 }
  0x18   :  { %p643_p10 = pnand %p641_p9, %p638_p8 }
  0x1a   :  { %646 = shalt.err (!%p643_p10)
}
  0x1b   :  { %s647_s1 = scalar_lea.vmem %s18_s27, 128  ;;  %p652_p12 = scmp.lt.s32.totalorder %s18_s27, %s18_s27 }
  0x1c   :  { %p648_p11 = scmp.ne.s32.totalorder %s18_s27, %s647_s1  ;;  %p653_p13 = scmp.lt.s32.totalorder %s647_s1, %s647_s1 }
  0x1e   :  { %p654_p0 = por %p653_p13, %p652_p12 }
  0x20   :  { %p655_p1 = pnand %p654_p0, %p648_p11 }
  0x22   :  { %658 = shalt.err (!%p655_p1)
}
  0x23   :  { %20 = dma.hbm_to_vmem [thread:$0]  %s817_s0, 128, %s18_s27, [#allocation3]  }
  0x24   :  { %s659_s14 = scalar_lea.hbm %s819_s2, 128 }
  0x25   :  { %p660_p2 = scmp.ne.s32.totalorder %s819_s2, %s659_s14  ;;  %p663_p3 = scmp.lt.u32.totalorder %s659_s14, %s819_s2 }
  0x27   :  { %p665_p4 = pnand %p663_p3, %p660_p2 }
  0x29   :  { %668 = shalt.err (!%p665_p4)
}
  0x2a   :  { %s669_s19 = scalar_lea.vmem %s40_s29, 128  ;;  %p674_p6 = scmp.lt.s32.totalorder %s40_s29, %s40_s29 }
  0x2b   :  { %p670_p5 = scmp.ne.s32.totalorder %s40_s29, %s669_s19  ;;  %p675_p7 = scmp.lt.s32.totalorder %s669_s19, %s669_s19 }
  0x2d   :  { %p676_p8 = por %p675_p7, %p674_p6 }
  0x2f   :  { %p677_p9 = pnand %p676_p8, %p670_p5 }
  0x31   :  { %680 = shalt.err (!%p677_p9)
}
  0x32   :  { %42 = dma.hbm_to_vmem [thread:$0]  %s819_s2, 128, %s40_s29, [#allocation6]  }
  0x33   :  { %703 = dma.done.wait [#allocation3], 128  }
  0x34   :  { %704 = vsyncadd [#allocation3], 4294967168 }
  0x35   :  { %705 = dma.done.wait [#allocation6], 6272  }
  0x36   :  { %706 = vsyncadd [#allocation6], 4294961024  ;;  %v714_v0 = vmov 0.0|0.0   ;;  %vm715_vm0 = vmmov 0   ;;  %v716_v1 = vmov 0.0   ;;  %v53_v2 = vld [vmem:[#allocation5] sm:$0xff] }
  0x37   :  { %526 = vmatprep.subr.bf16.mxu0 %v714_v0  ;;  %453 = vmatprep.mubr.msk.f32.mxu0 %vm715_vm0, %v716_v1  ;;  %v54_v3 = vld [vmem:[#allocation5 + $0x8] sm:$0xff]  ;;  %v55_v4 = vld [vmem:[#allocation5 + $0x10] sm:$0xff]  ;;  %v56_v6 = vld [vmem:[#allocation5 + $0x18] sm:$0xff]  ;;  %s718_s2 = smov [#allocation8]  }
  0x38   :  { %550 = vmatprep.subr.bf16.mxu1 %v714_v0  ;;  %488 = vmatprep.mubr.msk.f32.mxu1 %vm715_vm0, %v716_v1  ;;  %v527_v5 = vpack.c.bf16 %v54_v3, %v53_v2  ;;  %v530_v7 = vpack.c.bf16 %v56_v6, %v55_v4  ;;  %v57_v8 = vld [vmem:[#allocation5 + $0x20] sm:$0xff]  ;;  %v58_v9 = vld [vmem:[#allocation5 + $0x28] sm:$0xff]  ;;  %v147_v12 = vld [vmem:[#allocation5 + $0x90] sm:$0xff]  ;;  %s355_s21 = sshll.u32 %s718_s2, 4  ;;  %s356_s21 = int_to_ptr.vmem [resolvable:$true] %s355_s21 }
  0x39   :  { %v145_v10 = vld [vmem:[#allocation5 + $0x80] sm:$0xff]  ;;  %v146_v11 = vld [vmem:[#allocation5 + $0x88] sm:$0xff]  ;;  %v148_v13 = vld [vmem:[#allocation5 + $0x98] sm:$0xff]  ;;  %v533_v14 = vpack.c.bf16 %v58_v9, %v57_v8  ;;  %s681_s22 = scalar_lea.vmem %s356_s21, 128  ;;  %p686_p11 = scmp.lt.s32.totalorder %s356_s21, %s356_s21 }
  0x3a   :  { %528 = vmatpush3.bf16.msra.mxu0 %v527_v5  ;;  %v551_v15 = vpack.c.bf16 %v146_v11, %v145_v10  ;;  %v59_v16 = vld [vmem:[#allocation5 + $0x30] sm:$0xff]  ;;  %v60_v17 = vld [vmem:[#allocation5 + $0x38] sm:$0xff]  ;;  %v554_v18 = vpack.c.bf16 %v148_v13, %v147_v12  ;;  %v149_v19 = vld [vmem:[#allocation5 + $0xa0] sm:$0xff]  ;;  %p682_p10 = scmp.ne.s32.totalorder %s356_s21, %s681_s22  ;;  %p687_p12 = scmp.lt.s32.totalorder %s681_s22, %s681_s22 }
  0x3b   :  { %529 = vmatprep.subr.bf16.mxu0 %v714_v0  ;;  %v150_v20 = vld [vmem:[#allocation5 + $0xa8] sm:$0xff]  ;;  %v536_v21 = vpack.c.bf16 %v60_v17, %v59_v16  ;;  %v61_v22 = vld [vmem:[#allocation5 + $0x40] sm:$0xff]  ;;  %v151_v25 = vld [vmem:[#allocation5 + $0xb0] sm:$0xff] }
  0x3c   :  { %552 = vmatpush3.bf16.msra.mxu1 %v551_v15  ;;  %v62_v23 = vld [vmem:[#allocation5 + $0x48] sm:$0xff]  ;;  %v557_v24 = vpack.c.bf16 %v150_v20, %v149_v19  ;;  %v152_v26 = vld [vmem:[#allocation5 + $0xb8] sm:$0xff]  ;;  %v63_v28 = vld [vmem:[#allocation5 + $0x50] sm:$0xff]  ;;  %p688_p13 = por %p687_p12, %p686_p11 }
  0x3d   :  { %553 = vmatprep.subr.bf16.mxu1 %v714_v0  ;;  %v539_v27 = vpack.c.bf16 %v62_v23, %v61_v22  ;;  %v64_v29 = vld [vmem:[#allocation5 + $0x58] sm:$0xff]  ;;  %v560_v30 = vpack.c.bf16 %v152_v26, %v151_v25  ;;  %v153_v31 = vld [vmem:[#allocation5 + $0xc0] sm:$0xff]  ;;  %v154_v32 = vld [vmem:[#allocation5 + $0xc8] sm:$0xff] }
  0x3e   :  { %531 = vmatpush3.bf16.msra.mxu0 %v530_v7  ;;  %v542_v33 = vpack.c.bf16 %v64_v29, %v63_v28  ;;  %v65_v34 = vld [vmem:[#allocation5 + $0x60] sm:$0xff]  ;;  %v66_v35 = vld [vmem:[#allocation5 + $0x68] sm:$0xff]  ;;  %v563_v36 = vpack.c.bf16 %v154_v32, %v153_v31  ;;  %v67_v38 = vld [vmem:[#allocation5 + $0x70] sm:$0xff]  ;;  %v717_v29 = vmov 0   ;;  %p689_p0 = pnand %p688_p13, %p682_p10 }
  0x3f   :  { %532 = vmatprep.subr.bf16.mxu0 %v714_v0  ;;  %v545_v37 = vpack.c.bf16 %v66_v35, %v65_v34  ;;  %v68_v39 = vld [vmem:[#allocation5 + $0x78] sm:$0xff]  ;;  %v155_v42 = vld [vmem:[#allocation5 + $0xd0] sm:$0xff]  ;;  %v157_v45 = vld [vmem:[#allocation5 + $0xe0] sm:$0xff]  ;;  %608 = vset.pattern.permute.xlu0 %v717_v29 }
  0x40   :  { %555 = vmatpush3.bf16.msra.mxu1 %v554_v18  ;;  %v548_v40 = vpack.c.bf16 %v68_v39, %v67_v38  ;;  %v52_v41 = vld [vmem:[#allocation2] sm:$0xff]  ;;  %v158_v46 = vld [vmem:[#allocation5 + $0xe8] sm:$0xff]  ;;  %v159_v48 = vld [vmem:[#allocation5 + $0xf0] sm:$0xff] }
  0x41   :  { %556 = vmatprep.subr.bf16.mxu1 %v714_v0  ;;  %v156_v43 = vld [vmem:[#allocation5 + $0xd8] sm:$0xff]  ;;  %v569_v47 = vpack.c.bf16 %v158_v46, %v157_v45  ;;  %v237_v51 = vld [vmem:[#allocation5 + $0x100] sm:$0xff]  ;;  %v238_v52 = vld [vmem:[#allocation5 + $0x108] sm:$0xff] }
  0x42   :  { %534 = vmatpush3.bf16.msra.mxu0 %v533_v14  ;;  %v566_v44 = vpack.c.bf16 %v156_v43, %v155_v42  ;;  %v160_v49 = vld [vmem:[#allocation5 + $0xf8] sm:$0xff]  ;;  %v239_v53 = vld [vmem:[#allocation5 + $0x110] sm:$0xff]  ;;  %v575_v54 = vpack.c.bf16 %v238_v52, %v237_v51  ;;  %v241_v57 = vld [vmem:[#allocation5 + $0x120] sm:$0xff] }
  0x43   :  { %535 = vmatprep.subr.bf16.mxu0 %v714_v0  ;;  %v572_v50 = vpack.c.bf16 %v160_v49, %v159_v48  ;;  %v240_v55 = vld [vmem:[#allocation5 + $0x118] sm:$0xff]  ;;  %v242_v58 = vld [vmem:[#allocation5 + $0x128] sm:$0xff]  ;;  %v243_v60 = vld [vmem:[#allocation5 + $0x130] sm:$0xff] }
  0x44   :  { %558 = vmatpush3.bf16.msra.mxu1 %v557_v24  ;;  %v578_v56 = vpack.c.bf16 %v240_v55, %v239_v53  ;;  %v581_v59 = vpack.c.bf16 %v242_v58, %v241_v57  ;;  %v244_v61 = vld [vmem:[#allocation5 + $0x138] sm:$0xff]  ;;  %v245_v63 = vld [vmem:[#allocation5 + $0x140] sm:$0xff]  ;;  %v247_v8 = vld [vmem:[#allocation5 + $0x150] sm:$0xff] }
  0x45   :  { %559 = vmatprep.subr.bf16.mxu1 %v714_v0  ;;  %v584_v62 = vpack.c.bf16 %v244_v61, %v243_v60  ;;  %v365_v3 = vld [vmem:[#allocation7] ss:$0 sm:$0xff]  ;;  %v248_v9 = vld [vmem:[#allocation5 + $0x158] sm:$0xff]  ;;  %v250_v12 = vld [vmem:[#allocation5 + $0x168] sm:$0xff] }
  0x46   :  { %537 = vmatpush3.bf16.msra.mxu0 %v536_v21  ;;  %v590_v10 = vpack.c.bf16 %v248_v9, %v247_v8  ;;  %v249_v11 = vld [vmem:[#allocation5 + $0x160] sm:$0xff]  ;;  %v251_v14 = vld [vmem:[#allocation5 + $0x170] sm:$0xff]  ;;  %v252_v15 = vld [vmem:[#allocation5 + $0x178] sm:$0xff] }
  0x47   :  { %538 = vmatprep.subr.bf16.mxu0 %v714_v0  ;;  %v593_v13 = vpack.c.bf16 %v250_v12, %v249_v11  ;;  %v596_v16 = vpack.c.bf16 %v252_v15, %v251_v14  ;;  %v366_v17 = vld [vmem:[#allocation7 + $0x1] ss:$0 sm:$0xff]  ;;  %v367_v22 = vld [vmem:[#allocation7 + $0x2] ss:$0 sm:$0xff]  ;;  %v368_v26 = vld [vmem:[#allocation7 + $0x3] ss:$0 sm:$0xff] }
  0x48   :  { %561 = vmatpush3.bf16.msra.mxu1 %v560_v30 }
  0x49   :  { %562 = vmatprep.subr.bf16.mxu1 %v714_v0 }
  0x4a   :  { %540 = vmatpush3.bf16.msra.mxu0 %v539_v27 }
  0x4b   :  { %541 = vmatprep.subr.bf16.mxu0 %v714_v0 }
  0x4c   :  { %564 = vmatpush3.bf16.msra.mxu1 %v563_v36 }
  0x4d   :  { %565 = vmatprep.subr.bf16.mxu1 %v714_v0 }
  0x4e   :  { %543 = vmatpush3.bf16.msra.mxu0 %v542_v33 }
  0x4f   :  { %544 = vmatprep.subr.bf16.mxu0 %v714_v0 }
  0x50   :  { %567 = vmatpush3.bf16.msra.mxu1 %v566_v44 }
  0x51   :  { %568 = vmatprep.subr.bf16.mxu1 %v714_v0 }
  0x52   :  { %546 = vmatpush3.bf16.msra.mxu0 %v545_v37 }
  0x53   :  { %547 = vmatprep.subr.bf16.mxu0 %v714_v0 }
  0x54   :  { %570 = vmatpush3.bf16.msra.mxu1 %v569_v47 }
  0x55   :  { %571 = vmatprep.subr.bf16.mxu1 %v714_v0 }
  0x56   :  { %549 = vmatpush3.bf16.msra.mxu0 %v548_v40 }
  0x57   :  { %574 = vmatprep.subr.bf16.mxu0 %v714_v0 }
  0x58   :  { %573 = vmatpush3.bf16.msra.mxu1 %v572_v50 }
  0x59   :  { %454 = vmatmul.mubr.f32.vlgmr.msra.gmra.mrb[0].mxu0 %v52_v41 }
  0x5a   :  { %523 = vmatprep.mubr.msk.f32.mxu0 %vm715_vm0, %v716_v1  ;;  %576 = vmatpush3.bf16.msra.mxu0 %v575_v54  ;;  %v246_v1 = vld [vmem:[#allocation5 + $0x148] sm:$0xff] }
  0x5b   :  { %577 = vmatprep.subr.bf16.mxu0 %v714_v0  ;;  %v587_v2 = vpack.c.bf16 %v246_v1, %v245_v63 }
  0x5e   :  { %579 = vmatpush3.bf16.msra.mxu0 %v578_v56 }
  0x5f   :  { %580 = vmatprep.subr.bf16.mxu0 %v714_v0 }
  0x62   :  { %582 = vmatpush3.bf16.msra.mxu0 %v581_v59 }
  0x63   :  { %583 = vmatprep.subr.bf16.mxu0 %v714_v0 }
  0x66   :  { %585 = vmatpush3.bf16.msra.mxu0 %v584_v62 }
  0x67   :  { %586 = vmatprep.subr.bf16.mxu0 %v714_v0 }
  0x6a   :  { %588 = vmatpush3.bf16.msra.mxu0 %v587_v2 }
  0x6b   :  { %589 = vmatprep.subr.bf16.mxu0 %v714_v0 }
  0x6e   :  { %591 = vmatpush3.bf16.msra.mxu0 %v590_v10 }
  0x6f   :  { %592 = vmatprep.subr.bf16.mxu0 %v714_v0 }
  0x72   :  { %594 = vmatpush3.bf16.msra.mxu0 %v593_v13 }
  0x73   :  { %595 = vmatprep.subr.bf16.mxu0 %v714_v0  ;;  %v369_v0 = vld [vmem:[#allocation7 + $0x4] ss:$0 sm:$0xff] }
  0x76   :  { %597 = vmatpush3.bf16.msra.mxu0 %v596_v16 }
 0x12c   :  { %v140_v4 = vpop.f32.mrb[0].mxu0 }
 0x12d   :  { %v141_v5 = vadd.f32 %v365_v3, %v140_v4  ;;  %v455_v6 = vpop.f32.mrb[1].mxu0 }
 0x12f   :  { %609 = vtanh.f32 %v141_v5 }
 0x139   :  { %v610_v7 = vpop.eup %609 }
 0x13a   :  { %489 = vmatmul.mubr.f32.vlgmr.msra.gmra.mrb[0].mxu1 %v610_v7 }
 0x20d   :  { %v232_v18 = vpop.f32.mrb[0].mxu1 }
 0x20e   :  { %v233_v19 = vadd.f32 %v366_v17, %v232_v18  ;;  %v490_v20 = vpop.f32.mrb[1].mxu1 }
 0x210   :  { %611 = vtanh.f32 %v233_v19 }
 0x21a   :  { %v612_v21 = vpop.eup %611 }
 0x21b   :  { %524 = vmatmul.mubr.f32.vlgmr.msra.gmra.mrb[2].mxu0 %v612_v21 }
 0x2ee   :  { %v324_v23 = vpop.f32.mrb[2].mxu0 }
 0x2ef   :  { %v325_v24 = vadd.f32 %v367_v22, %v324_v23  ;;  %v525_v25 = vpop.f32.mrb[3].mxu0 }
 0x2f1   :  { %613 = vtanh.f32 %v325_v24 }
 0x2fb   :  { %v614_v27 = vpop.eup %613 }
 0x2fc   :  { %v335_v28 = vmul.f32 %v614_v27, %v368_v26 }
 0x2fe   :  { %336 = vadd.xlane.f32.xlu0 %v335_v28 }
 0x38b   :  { %v337_v30 = vpop.xlane.xlu0 %336 }
 0x38c   :  { %v342_v31 = vadd.f32 %v369_v0, %v337_v30 }
 0x38e   :  { %345 = vperm.xlu0 %608, %v342_v31  }
 0x40d   :  { %v346_v32 = vpop.permute.xlu0 %345 }
 0x40e   :  { %348 = vst [vmem:[#allocation8] sm:$0xff] %v346_v32 }
 0x40f   :  { %692 = shalt.err (!%p689_p0)
}
 0x410   :  { %s693_s25 = scalar_lea.hbm %s820_s3, 128 }
 0x411   :  { %p694_p1 = scmp.ne.s32.totalorder %s820_s3, %s693_s25  ;;  %p697_p2 = scmp.lt.u32.totalorder %s693_s25, %s820_s3 }
 0x413   :  { %p699_p3 = pnand %p697_p2, %p694_p1 }
 0x415   :  { %702 = shalt.err (!%p699_p3)
}
 0x416   :  { %358 = dma.vmem_to_hbm [thread:$0]  %s356_s21, 128, %s820_s3, [#allocation4]  }
 0x417   :  { %707 = dma.done.wait [#allocation4], 128  }
 0x418   :  { %708 = vsyncadd [#allocation4], 4294967168 }
 0x419   :  { %362 = vsyncpa [#allocation3], 1 }
 0x41a   :  { %363 = vsyncpa [#allocation6], 1 }
 0x41b   :  { %364 = vsyncpa [#allocation4], 1 }

</bundles_post_ra>
